<compile_context>
chip_gen: v6e
topology: v6e:2x2x1
jax: 0.10.0
libtpu: 0.0.40
codegen_flags: <defaults>
</compile_context>

<pallas_src>
import functools

import jax
import jax.numpy as jnp
from jax.experimental import pallas as pl
from jax.experimental.pallas import tpu as pltpu


def _actor_kernel(x_ref, w1_ref, b1_ref, w2_ref, b2_ref,
                  w3m_ref, b3m_ref, w3s_ref, b3s_ref,
                  mu_ref, std_ref, *, log_std_min, log_std_max):
    # Hidden layer 1: Linear (bf16 operands, f32 accumulate) + bias + ReLU in f32.
    h1 = jnp.dot(x_ref[...], w1_ref[...], preferred_element_type=jnp.float32)
    h1 = jnp.maximum(h1 + b1_ref[...], 0.0)

    # Hidden layer 2.
    h2 = jnp.dot(h1.astype(w2_ref.dtype), w2_ref[...],
                 preferred_element_type=jnp.float32)
    h2 = jnp.maximum(h2 + b2_ref[...], 0.0)
    h2 = h2.astype(w3m_ref.dtype)

    # Output heads: mu and log_std (== chunk(2, dim=-1) of the last Linear).
    mu = jnp.dot(h2, w3m_ref[...], preferred_element_type=jnp.float32) + b3m_ref[...]
    ls = jnp.dot(h2, w3s_ref[...], preferred_element_type=jnp.float32) + b3s_ref[...]

    # log_std squashing: tanh then rescale into [log_std_min, log_std_max].
    ls = jnp.tanh(ls)
    ls = log_std_min + 0.5 * (log_std_max - log_std_min) * (ls + 1.0)

    # output_act is Identity under squash_normal=True, so mu is emitted as-is.
    mu_ref[...] = mu.astype(mu_ref.dtype)
    std_ref[...] = jnp.exp(ls).astype(std_ref.dtype)


def _round_up(x, m):
    return ((x + m - 1) // m) * m


def actor_forward(obs, params, *, log_std_bounds=(-5.0, 2.0), block_b=256):
    """obs: (B, obs_dim) f32. Returns (mu, std), each (B, action_dim) f32 —
    the parameters of Independent(SquashedNormal(mu, std), 1)."""
    w1, b1, w2, b2, w3, b3 = params          # weights stored (in_features, out_features)
    B, Din = obs.shape
    H = w1.shape[1]
    A = w3.shape[1] // 2                     # action dim (last layer outputs 2*A)

    # chunk(2, dim=-1) of the MLP output == splitting the last layer's columns.
    w3_mu, w3_ls = w3[:, :A], w3[:, A:]
    b3_mu, b3_ls = b3[:, :A], b3[:, A:]

    # bf16 MXU operands, f32 accumulation; biases stay f32 for the VPU path.
    bf = jnp.bfloat16
    obs_bf = obs.astype(bf)
    w1_bf, w2_bf = w1.astype(bf), w2.astype(bf)
    w3m_bf, w3s_bf = w3_mu.astype(bf), w3_ls.astype(bf)

    # Batch tiling: TB rows per grid step (>=8 sublanes, capped for v7x VMEM),
    # weights/biases resident across iterations.
    TB = min(block_b, _round_up(B, 8))
    B_pad = _round_up(B, TB)
    if B_pad != B:
        obs_bf = jnp.pad(obs_bf, ((0, B_pad - B), (0, 0)))
    grid = (pl.cdiv(B_pad, TB),)

    resident = lambda shape: pl.BlockSpec(shape, lambda i: (0, 0))
    kernel = functools.partial(_actor_kernel,
                               log_std_min=float(log_std_bounds[0]),
                               log_std_max=float(log_std_bounds[1]))

    mu, std = pl.pallas_call(
        kernel,
        out_shape=(jax.ShapeDtypeStruct((B_pad, A), jnp.float32),
                   jax.ShapeDtypeStruct((B_pad, A), jnp.float32)),
        grid=grid,
        in_specs=[
            pl.BlockSpec((TB, Din), lambda i: (i, 0)),   # obs tile (pipelined)
            resident((Din, H)),                          # w1
            resident((1, H)),                            # b1
            resident((H, H)),                            # w2
            resident((1, H)),                            # b2
            resident((H, A)),                            # w3 (mu head)
            resident((1, A)),                            # b3 (mu head)
            resident((H, A)),                            # w3 (log_std head)
            resident((1, A)),                            # b3 (log_std head)
        ],
        out_specs=[
            pl.BlockSpec((TB, A), lambda i: (i, 0)),     # mu
            pl.BlockSpec((TB, A), lambda i: (i, 0)),     # std
        ],
        compiler_params=pltpu.CompilerParams(
            dimension_semantics=("parallel",),           # megacore split on v7x
            vmem_limit_bytes=32 * 1024 * 1024,
        ),
    )(obs_bf, w1_bf, b1, w2_bf, b2, w3m_bf, b3_mu, w3s_bf, b3_ls)

    if B_pad != B:
        mu, std = mu[:B], std[:B]
    # TODO(synk): torch.distributions plumbing (TanhTransform / Independent,
    # sampling, log_prob) has no Pallas equivalent; (mu, std) fully parameterize it.
    return mu, std


def init_params(key, obs_dim, action_dim, hidden):
    """Synthetic init; shapes match MLP(obs_dim, 2*action_dim, hidden_layers=(H, H))."""
    k1, k2, k3, k4, k5, k6 = jax.random.split(key, 6)
    w1 = jax.random.normal(k1, (obs_dim, hidden), jnp.float32) / jnp.sqrt(obs_dim)
    b1 = 0.1 * jax.random.normal(k4, (1, hidden), jnp.float32)
    w2 = jax.random.normal(k2, (hidden, hidden), jnp.float32) / jnp.sqrt(hidden)
    b2 = 0.1 * jax.random.normal(k5, (1, hidden), jnp.float32)
    w3 = jax.random.normal(k3, (hidden, 2 * action_dim), jnp.float32) / jnp.sqrt(hidden)
    b3 = 0.1 * jax.random.normal(k6, (1, 2 * action_dim), jnp.float32)
    return (w1, b1, w2, b2, w3, b3)


def reference_forward(obs, params, log_std_bounds=(-5.0, 2.0)):
    """Pure-JAX reference with the same bf16-operand / f32-accumulate recipe."""
    w1, b1, w2, b2, w3, b3 = params
    bf = jnp.bfloat16
    h1 = jnp.dot(obs.astype(bf), w1.astype(bf), preferred_element_type=jnp.float32) + b1
    h1 = jnp.maximum(h1, 0.0)
    h2 = jnp.dot(h1.astype(bf), w2.astype(bf), preferred_element_type=jnp.float32) + b2
    h2 = jnp.maximum(h2, 0.0)
    out = jnp.dot(h2.astype(bf), w3.astype(bf), preferred_element_type=jnp.float32) + b3
    A = w3.shape[1] // 2
    mu, log_std = out[:, :A], out[:, A:]
    lo, hi = log_std_bounds
    log_std = jnp.tanh(log_std)
    log_std = lo + 0.5 * (hi - lo) * (log_std + 1.0)
    return mu, jnp.exp(log_std)


if __name__ == "__main__":
    key = jax.random.PRNGKey(0)
    k_obs, k_params = jax.random.split(key)

    B, OBS_DIM, HIDDEN, ACT_DIM = 8, 16, 32, 4
    obs = jax.random.normal(k_obs, (B, OBS_DIM), jnp.float32)
    params = init_params(k_params, OBS_DIM, ACT_DIM, HIDDEN)

    mu, std = actor_forward(obs, params)
    (mu, std) = jax.block_until_ready((mu, std))

    mu_ref, std_ref = reference_forward(obs, params)
    assert mu.shape == (B, ACT_DIM), mu.shape
    assert std.shape == (B, ACT_DIM), std.shape
    assert bool(jnp.all(std > 0.0)), "std must be positive"
    assert jnp.allclose(mu, mu_ref, atol=1e-3, rtol=1e-3), (mu, mu_ref)
    assert jnp.allclose(std, std_ref, atol=1e-3, rtol=1e-3), (std, std_ref)

    print("KERNEL_OK")
</pallas_src>

<mosaic_0001>
module attributes {stable_mosaic.version = 11 : i64} {
  func.func @_actor_kernel(%arg0: i32, %arg1: memref<8x16xbf16, #tpu.memory_space<vmem>>, %arg2: memref<16x32xbf16, #tpu.memory_space<vmem>>, %arg3: memref<1x32xf32, #tpu.memory_space<vmem>>, %arg4: memref<32x32xbf16, #tpu.memory_space<vmem>>, %arg5: memref<1x32xf32, #tpu.memory_space<vmem>>, %arg6: memref<32x4xbf16, #tpu.memory_space<vmem>>, %arg7: memref<1x4xf32, #tpu.memory_space<vmem>>, %arg8: memref<32x4xbf16, #tpu.memory_space<vmem>>, %arg9: memref<1x4xf32, #tpu.memory_space<vmem>>, %arg10: memref<8x4xf32, #tpu.memory_space<vmem>>, %arg11: memref<8x4xf32, #tpu.memory_space<vmem>>) attributes {dimension_semantics = [#tpu.dimension_semantics<parallel>], iteration_bounds = array<i64: 1>, scalar_prefetch = 0 : i64, scratch_operands = 0 : i64, tpu.core_type = #tpu.core_type<tc>, window_params = [{transform_indices = @transform_0, window_bounds = array<i64: 8, 16>}, {pipeline_mode = #tpu.pipeline_mode<synchronous>, transform_indices = @transform_1, window_bounds = array<i64: 16, 32>}, {pipeline_mode = #tpu.pipeline_mode<synchronous>, transform_indices = @transform_2, window_bounds = array<i64: 1, 32>}, {pipeline_mode = #tpu.pipeline_mode<synchronous>, transform_indices = @transform_3, window_bounds = array<i64: 32, 32>}, {pipeline_mode = #tpu.pipeline_mode<synchronous>, transform_indices = @transform_4, window_bounds = array<i64: 1, 32>}, {pipeline_mode = #tpu.pipeline_mode<synchronous>, transform_indices = @transform_5, window_bounds = array<i64: 32, 4>}, {pipeline_mode = #tpu.pipeline_mode<synchronous>, transform_indices = @transform_6, window_bounds = array<i64: 1, 4>}, {pipeline_mode = #tpu.pipeline_mode<synchronous>, transform_indices = @transform_7, window_bounds = array<i64: 32, 4>}, {pipeline_mode = #tpu.pipeline_mode<synchronous>, transform_indices = @transform_8, window_bounds = array<i64: 1, 4>}, {transform_indices = @transform_9, window_bounds = array<i64: 8, 4>}, {transform_indices = @transform_10, window_bounds = array<i64: 8, 4>}]} {
    %c0 = arith.constant 0 : index
    %c0_0 = arith.constant 0 : index
    %0 = vector.load %arg1[%c0, %c0_0] : memref<8x16xbf16, #tpu.memory_space<vmem>>, vector<8x16xbf16>
    %c0_1 = arith.constant 0 : index
    %c0_2 = arith.constant 0 : index
    %1 = vector.load %arg2[%c0_1, %c0_2] : memref<16x32xbf16, #tpu.memory_space<vmem>>, vector<16x32xbf16>
    %cst = arith.constant dense<0.000000e+00> : vector<8x32xf32>
    %2 = tpu.matmul %0, %1, %cst {dimension_numbers = #tpu.dot_dimension_numbers<[1], [0], [0], [1], [0, 0, 1, 1], [], []>} : vector<8x16xbf16>, vector<16x32xbf16>, vector<8x32xf32> -> vector<8x32xf32>
    %c0_3 = arith.constant 0 : index
    %c0_4 = arith.constant 0 : index
    %3 = vector.load %arg3[%c0_3, %c0_4] : memref<1x32xf32, #tpu.memory_space<vmem>>, vector<1x32xf32>
    %4 = vector.broadcast %3 : vector<1x32xf32> to vector<8x32xf32>
    %5 = arith.addf %2, %4 : vector<8x32xf32>
    %cst_5 = arith.constant 0.000000e+00 : f32
    %6 = vector.broadcast %cst_5 : f32 to vector<8x32xf32>
    %7 = arith.maximumf %5, %6 : vector<8x32xf32>
    %8 = arith.truncf %7 : vector<8x32xf32> to vector<8x32xbf16>
    %c0_6 = arith.constant 0 : index
    %c0_7 = arith.constant 0 : index
    %9 = vector.load %arg4[%c0_6, %c0_7] : memref<32x32xbf16, #tpu.memory_space<vmem>>, vector<32x32xbf16>
    %cst_8 = arith.constant dense<0.000000e+00> : vector<8x32xf32>
    %10 = tpu.matmul %8, %9, %cst_8 {dimension_numbers = #tpu.dot_dimension_numbers<[1], [0], [0], [1], [0, 0, 1, 1], [], []>} : vector<8x32xbf16>, vector<32x32xbf16>, vector<8x32xf32> -> vector<8x32xf32>
    %c0_9 = arith.constant 0 : index
    %c0_10 = arith.constant 0 : index
    %11 = vector.load %arg5[%c0_9, %c0_10] : memref<1x32xf32, #tpu.memory_space<vmem>>, vector<1x32xf32>
    %12 = vector.broadcast %11 : vector<1x32xf32> to vector<8x32xf32>
    %13 = arith.addf %10, %12 : vector<8x32xf32>
    %cst_11 = arith.constant 0.000000e+00 : f32
    %14 = vector.broadcast %cst_11 : f32 to vector<8x32xf32>
    %15 = arith.maximumf %13, %14 : vector<8x32xf32>
    %16 = arith.truncf %15 : vector<8x32xf32> to vector<8x32xbf16>
    %c0_12 = arith.constant 0 : index
    %c0_13 = arith.constant 0 : index
    %17 = vector.load %arg6[%c0_12, %c0_13] : memref<32x4xbf16, #tpu.memory_space<vmem>>, vector<32x4xbf16>
    %cst_14 = arith.constant dense<0.000000e+00> : vector<8x4xf32>
    %18 = tpu.matmul %16, %17, %cst_14 {dimension_numbers = #tpu.dot_dimension_numbers<[1], [0], [0], [1], [0, 0, 1, 1], [], []>} : vector<8x32xbf16>, vector<32x4xbf16>, vector<8x4xf32> -> vector<8x4xf32>
    %c0_15 = arith.constant 0 : index
    %c0_16 = arith.constant 0 : index
    %19 = vector.load %arg7[%c0_15, %c0_16] : memref<1x4xf32, #tpu.memory_space<vmem>>, vector<1x4xf32>
    %20 = vector.broadcast %19 : vector<1x4xf32> to vector<8x4xf32>
    %21 = arith.addf %18, %20 : vector<8x4xf32>
    %c0_17 = arith.constant 0 : index
    %c0_18 = arith.constant 0 : index
    %22 = vector.load %arg8[%c0_17, %c0_18] : memref<32x4xbf16, #tpu.memory_space<vmem>>, vector<32x4xbf16>
    %cst_19 = arith.constant dense<0.000000e+00> : vector<8x4xf32>
    %23 = tpu.matmul %16, %22, %cst_19 {dimension_numbers = #tpu.dot_dimension_numbers<[1], [0], [0], [1], [0, 0, 1, 1], [], []>} : vector<8x32xbf16>, vector<32x4xbf16>, vector<8x4xf32> -> vector<8x4xf32>
    %c0_20 = arith.constant 0 : index
    %c0_21 = arith.constant 0 : index
    %24 = vector.load %arg9[%c0_20, %c0_21] : memref<1x4xf32, #tpu.memory_space<vmem>>, vector<1x4xf32>
    %25 = vector.broadcast %24 : vector<1x4xf32> to vector<8x4xf32>
    %26 = arith.addf %23, %25 : vector<8x4xf32>
    %27 = math.tanh %26 : vector<8x4xf32>
    %cst_22 = arith.constant 1.000000e+00 : f32
    %28 = vector.broadcast %cst_22 : f32 to vector<8x4xf32>
    %29 = arith.addf %27, %28 : vector<8x4xf32>
    %cst_23 = arith.constant 3.500000e+00 : f32
    %30 = vector.broadcast %cst_23 : f32 to vector<8x4xf32>
    %31 = arith.mulf %30, %29 : vector<8x4xf32>
    %cst_24 = arith.constant -5.000000e+00 : f32
    %32 = vector.broadcast %cst_24 : f32 to vector<8x4xf32>
    %33 = arith.addf %32, %31 : vector<8x4xf32>
    %c0_25 = arith.constant 0 : index
    %c0_26 = arith.constant 0 : index
    %34 = vector.load %arg10[%c0_25, %c0_26] : memref<8x4xf32, #tpu.memory_space<vmem>>, vector<8x4xf32>
    tpu.vector_store %arg10[%c0_25, %c0_26], %21 {strides = array<i32>} : memref<8x4xf32, #tpu.memory_space<vmem>>, vector<8x4xf32>,
    %35 = math.exp %33 : vector<8x4xf32>
    %c0_27 = arith.constant 0 : index
    %c0_28 = arith.constant 0 : index
    %36 = vector.load %arg11[%c0_27, %c0_28] : memref<8x4xf32, #tpu.memory_space<vmem>>, vector<8x4xf32>
    tpu.vector_store %arg11[%c0_27, %c0_28], %35 {strides = array<i32>} : memref<8x4xf32, #tpu.memory_space<vmem>>, vector<8x4xf32>,
    return
  }
  func.func @transform_0(%arg0: i32) -> (i32, i32) {
    %c0_i32 = arith.constant 0 : i32
    %c0_i32_0 = arith.constant 0 : i32
    return %arg0, %c0_i32 : i32, i32
  }
  func.func @transform_1(%arg0: i32) -> (i32, i32) {
    %c0_i32 = arith.constant 0 : i32
    %c0_i32_0 = arith.constant 0 : i32
    %c0_i32_1 = arith.constant 0 : i32
    return %c0_i32, %c0_i32_0 : i32, i32
  }
  func.func @transform_2(%arg0: i32) -> (i32, i32) {
    %c0_i32 = arith.constant 0 : i32
    %c0_i32_0 = arith.constant 0 : i32
    %c0_i32_1 = arith.constant 0 : i32
    return %c0_i32, %c0_i32_0 : i32, i32
  }
  func.func @transform_3(%arg0: i32) -> (i32, i32) {
    %c0_i32 = arith.constant 0 : i32
    %c0_i32_0 = arith.constant 0 : i32
    %c0_i32_1 = arith.constant 0 : i32
    return %c0_i32, %c0_i32_0 : i32, i32
  }
  func.func @transform_4(%arg0: i32) -> (i32, i32) {
    %c0_i32 = arith.constant 0 : i32
    %c0_i32_0 = arith.constant 0 : i32
    %c0_i32_1 = arith.constant 0 : i32
    return %c0_i32, %c0_i32_0 : i32, i32
  }
  func.func @transform_5(%arg0: i32) -> (i32, i32) {
    %c0_i32 = arith.constant 0 : i32
    %c0_i32_0 = arith.constant 0 : i32
    %c0_i32_1 = arith.constant 0 : i32
    return %c0_i32, %c0_i32_0 : i32, i32
  }
  func.func @transform_6(%arg0: i32) -> (i32, i32) {
    %c0_i32 = arith.constant 0 : i32
    %c0_i32_0 = arith.constant 0 : i32
    %c0_i32_1 = arith.constant 0 : i32
    return %c0_i32, %c0_i32_0 : i32, i32
  }
  func.func @transform_7(%arg0: i32) -> (i32, i32) {
    %c0_i32 = arith.constant 0 : i32
    %c0_i32_0 = arith.constant 0 : i32
    %c0_i32_1 = arith.constant 0 : i32
    return %c0_i32, %c0_i32_0 : i32, i32
  }
  func.func @transform_8(%arg0: i32) -> (i32, i32) {
    %c0_i32 = arith.constant 0 : i32
    %c0_i32_0 = arith.constant 0 : i32
    %c0_i32_1 = arith.constant 0 : i32
    return %c0_i32, %c0_i32_0 : i32, i32
  }
  func.func @transform_9(%arg0: i32) -> (i32, i32) {
    %c0_i32 = arith.constant 0 : i32
    %c0_i32_0 = arith.constant 0 : i32
    return %arg0, %c0_i32 : i32, i32
  }
  func.func @transform_10(%arg0: i32) -> (i32, i32) {
    %c0_i32 = arith.constant 0 : i32
    %c0_i32_0 = arith.constant 0 : i32
    return %arg0, %c0_i32 : i32, i32
  }
}

</mosaic_0001>

<bundles_post_ra>
// kernel: tpu_custom_call.1
= control target key start
LH: loop header
LB: loop body
LE: loop exit
PB: predicated region body
PF: predicated region fallthrough
CT: control target
= control target key end

     0   :  { %v381_v0 = vmov 0.0   ;;  %vm382_vm0 = vmmov 0   ;;  %vm51_vm1 = vcmask 130048   ;;  %vm120_vm2 = vcmask 261120   ;;  %s489_s1 = inlined_call_operand.vmem [shape: bf16[16,32], index: 1, kind: input, shape index: {}]   ;;  %s490_s0 = inlined_call_operand.vmem [shape: bf16[8,16], index: 0, kind: input, shape index: {}]   ;;  %s491_s3 = inlined_call_operand.vmem [shape: bf16[32,32], index: 3, kind: input, shape index: {}]   ;;  %s492_s7 = inlined_call_operand.vmem [shape: bf16[32,4], index: 7, kind: input, shape index: {}]   ;;  %s493_s2 = inlined_call_operand.vmem [shape: f32[1,32], index: 2, kind: input, shape index: {}]   ;;  %s494_s5 = inlined_call_operand.vmem [shape: bf16[32,4], index: 5, kind: input, shape index: {}]   ;;  %s495_s4 = inlined_call_operand.vmem [shape: f32[1,32], index: 4, kind: input, shape index: {}]   ;;  %s496_s6 = inlined_call_operand.vmem [shape: f32[1,4], index: 6, kind: input, shape index: {}]   ;;  %s497_s8 = inlined_call_operand.vmem [shape: f32[1,4], index: 8, kind: input, shape index: {}]   ;;  %s498_s9 = inlined_call_operand.vmem [shape: f32[8,4], index: 9, kind: output, shape index: {0}]   ;;  %s499_s10 = inlined_call_operand.vmem [shape: f32[8,4], index: 10, kind: output, shape index: {1}]  }
   0x1   :  { %338 = vmatprep.subr.bf16.mxu0 %v381_v0  ;;  %v370_v1 = vld [vmem:[%s489_s1] sm:$0xff]   ;;  %340 = vmatprep.mubr.msk.bf16.mxu0 %vm382_vm0, %v381_v0  ;;  %v371_v3 = vld [vmem:[%s491_s3 + $0x8] sm:$0xff]   ;;  %vm299_vm3 = vcmask 31744  }
   0x2   :  { %344 = vmatprep.subr.bf16.mxu1 %v381_v0  ;;  %348 = vmatprep.mubr.msk.bf16.mxu1 %vm382_vm0, %v381_v0  ;;  %v35_v2 = vld [vmem:[%s490_s0] sm:$0xf]  ;;  %v373_v11 = vld [vmem:[%s492_s7 + $0x8] sm:$0xff]  }
   0x3   :  { %339 = vmatpush3.bf16.msra.mxu0 %v370_v1  ;;  %345 = vmatpush3.bf16.msra.mxu1 %v371_v3  ;;  %v372_v4 = vld [vmem:[%s491_s3] sm:$0xff]   ;;  %v374_v14 = vld [vmem:[%s494_s5 + $0x8] sm:$0xff]  }
   0x4   :  { %352 = vmatprep.subr.bf16.mxu0 %v381_v0  ;;  %346 = vmatprep.subr.bf16.mxu1 %v381_v0  ;;  %v312_v5 = vld [vmem:[%s493_s2] ss:$0 sm:$0xff] }
   0x5   :  { %v375_v15 = vld [vmem:[%s492_s7] sm:$0xff]  }
   0x6   :  { %341 = vmatmul.mubr.msk.bf16.vlgmr.msra.gmra.mxu0 %vm51_vm1, %v35_v2  ;;  %v376_v16 = vld [vmem:[%s494_s5] sm:$0xff]  }
   0x7   :  { %356 = vmatprep.mubr.msk.bf16.mxu0 %vm382_vm0, %v381_v0  ;;  %347 = vmatpush3.bf16.msra.mxu1 %v372_v4  ;;  %v315_v17 = vld [vmem:[%s495_s4] ss:$0 sm:$0xff] }
   0x8   :  { %360 = vmatprep.subr.bf16.mxu1 %v381_v0  ;;  %353 = vmatpush3.bf16.msra.mxu0 %v374_v14  ;;  %v319_v25 = vld [vmem:[%s496_s6] ss:$0 sm:$0xff] }
   0x9   :  { %354 = vmatprep.subr.bf16.mxu0 %v381_v0  ;;  %v323_v26 = vld [vmem:[%s497_s8] ss:$0 sm:$0xff] }
   0xc   :  { %355 = vmatpush3.bf16.msra.mxu0 %v376_v16 }
  0xc6   :  { %v89_v6 = vpop.f32.mrf.mxu0 }
  0xc7   :  { %v90_v7 = vadd.f32 %v312_v5, %v89_v6 }
  0xc8   :  { %v342_v8 = vpop.f32.mrf.mxu0 }
  0xc9   :  { %v95_v9 = vmax.f32 %v90_v7, 0.0 }
  0xca   :  { %v92_v10 = vpop.f32.mrf.mxu0 }
  0xcb   :  { %v96_v12 = vpack.c.bf16 %v95_v9, %v95_v9 }
  0xcc   :  { %v343_v13 = vpop.f32.mrf.mxu0 }
  0xcd   :  { %349 = vmatmul.mubr.msk.bf16.vlgmr.msra.gmra.mxu1 %vm120_vm2, %v96_v12 }
  0xce   :  { %361 = vmatpush3.bf16.msra.mxu1 %v373_v11  ;;  %364 = vmatprep.mubr.msk.bf16.mxu1 %vm382_vm0, %v381_v0 }
  0xcf   :  { %362 = vmatprep.subr.bf16.mxu1 %v381_v0 }
  0xd2   :  { %363 = vmatpush3.bf16.msra.mxu1 %v375_v15 }
 0x18d   :  { %v158_v18 = vpop.f32.mrf.mxu1 }
 0x18e   :  { %v159_v19 = vadd.f32 %v315_v17, %v158_v18 }
 0x18f   :  { %v350_v20 = vpop.f32.mrf.mxu1 }
 0x190   :  { %v164_v21 = vmax.f32 %v159_v19, 0.0 }
 0x191   :  { %v161_v22 = vpop.f32.mrf.mxu1 }
 0x192   :  { %v165_v23 = vpack.c.bf16 %v164_v21, %v164_v21 }
 0x193   :  { %v351_v24 = vpop.f32.mrf.mxu1 }
 0x194   :  { %357 = vmatmul.mubr.msk.bf16.vlgmr.msra.gmra.mxu0 %vm120_vm2, %v165_v23  ;;  %365 = vmatmul.mubr.msk.bf16.vlgmr.msra.gmra.mxu1 %vm120_vm2, %v165_v23 }
 0x254   :  { %v226_v27 = vpop.f32.mrf.mxu0  ;;  %v289_v28 = vpop.f32.mrf.mxu1 }
 0x255   :  { %v227_v29 = vadd.f32 %v319_v25, %v226_v27  ;;  %v290_v30 = vadd.f32 %v323_v26, %v289_v28 }
 0x256   :  { %v358_v31 = vpop.f32.mrf.mxu0  ;;  %v366_v32 = vpop.f32.mrf.mxu1 }
 0x257   :  { %300 = vst.msk [vmem:[%s498_s9] sm:$0xff] %vm299_vm3, %v227_v29  ;;  %377 = vtanh.f32 %v290_v30 }
 0x258   :  { %v229_v33 = vpop.f32.mrf.mxu0  ;;  %v292_v34 = vpop.f32.mrf.mxu1 }
 0x25a   :  { %v359_v35 = vpop.f32.mrf.mxu0  ;;  %v367_v36 = vpop.f32.mrf.mxu1 }
 0x264   :  { %v378_v37 = vpop.eup %377 }
 0x265   :  { %v296_v38 = vadd.f32 1.0, %v378_v37 }
 0x267   :  { %v297_v39 = vmul.f32 3.5, %v296_v38 }
 0x269   :  { %v298_v40 = vadd.f32 -5.0, %v297_v39 }
 0x26b   :  { %v301_v41 = vmul.f32 1.442695, %v298_v40 }
 0x26d   :  { %379 = vpow2.f32 %v301_v41 }
 0x27a   :  { %v380_v42 = vpop.eup %379 }
 0x27b   :  { %303 = vst.msk [vmem:[%s499_s10] sm:$0xff] %vm299_vm3, %v380_v42 }

</bundles_post_ra>
